<compile_context>
chip_gen: v6e
topology: v6e:2x2x1
jax: 0.10.0
libtpu: 0.0.40
codegen_flags: <defaults>
</compile_context>

<pallas_src>
import functools

import jax
import jax.numpy as jnp
from jax.experimental import pallas as pl
from jax.experimental.pallas import tpu as pltpu

LN_EPS = 1e-5  # torch.nn.LayerNorm default


def _round_up(x, m):
    return (x + m - 1) // m * m


def _classifier_kernel(x_ref, w1t_ref, b1_ref, gamma_ref, beta_ref,
                       wot_ref, bo_ref, out_ref, *, hidden_size):
    # ---- Linear(E -> H) + ReLU : bf16 inputs, f32 accumulate on the MXU ----
    h = jnp.dot(x_ref[...], w1t_ref[...],
                preferred_element_type=jnp.float32)          # (TB, H_pad) f32
    h = h + b1_ref[...]                                       # padded bias lanes are 0
    h = jnp.maximum(h, 0.0)                                    # padded lanes stay exactly 0

    # ---- LayerNorm over the TRUE hidden_size lanes only (f32 math) ----
    h_pad = h.shape[-1]
    lane = jax.lax.broadcasted_iota(jnp.int32, (1, h_pad), 1)
    mask = (lane < hidden_size).astype(jnp.float32)            # (1, H_pad)
    inv_h = 1.0 / float(hidden_size)

    mean = jnp.sum(h, axis=-1, keepdims=True) * inv_h          # padded lanes are 0 -> sum ok
    centered = (h - mean) * mask                               # zero out padded lanes
    var = jnp.sum(centered * centered, axis=-1, keepdims=True) * inv_h
    hn = centered * jax.lax.rsqrt(var + LN_EPS)
    hn = hn * gamma_ref[...] + beta_ref[...]                   # padded gamma/beta are 0

    # NOTE: nn.Dropout after LayerNorm is identity in eval mode (no-op here).

    # ---- Linear(H -> C): folded into one padded 128x128 MXU pass (f32) ----
    # Padded rows of wot / lanes of bo are zero, so columns [:C] are exact.
    logits = jnp.dot(hn, wot_ref[...], preferred_element_type=jnp.float32)
    out_ref[...] = logits + bo_ref[...]                        # (TB, C_pad) lane-dense store


def prep_params(params):
    """One-time parameter prep: transpose, pad feature dims to 128 lanes, cast the
    first-matmul weight to bf16. Call once per model, NOT per forward call."""
    H, E = params["w1"].shape
    C = params["wo"].shape[0]
    h_pad = _round_up(H, 128)
    c_pad = _round_up(C, 128)

    w1t = jnp.zeros((E, h_pad), jnp.float32).at[:, :H].set(params["w1"].T)
    wot = jnp.zeros((h_pad, c_pad), jnp.float32).at[:H, :C].set(params["wo"].T)
    b1 = jnp.zeros((1, h_pad), jnp.float32).at[:, :H].set(params["b1"])
    gamma = jnp.zeros((1, h_pad), jnp.float32).at[:, :H].set(params["ln_gamma"])
    beta = jnp.zeros((1, h_pad), jnp.float32).at[:, :H].set(params["ln_beta"])
    bo = jnp.zeros((1, c_pad), jnp.float32).at[:, :C].set(params["bo"])

    return {
        "w1t": w1t.astype(jnp.bfloat16),   # bf16 feed to the first MXU matmul
        "b1": b1, "gamma": gamma, "beta": beta,
        "wot": wot, "bo": bo,              # f32: tiny second matmul, keeps accuracy
        "hidden_size": int(H), "n_classes": int(C),
    }


def classifier_forward(x, prepped, *, tb=512):
    """x: (B, E) float32. prepped: output of prep_params(). Returns (B, C) f32 logits."""
    B, E = x.shape
    H = prepped["hidden_size"]
    C = prepped["n_classes"]
    w1t, b1, gamma, beta, wot, bo = (
        prepped["w1t"], prepped["b1"], prepped["gamma"],
        prepped["beta"], prepped["wot"], prepped["bo"])
    h_pad = w1t.shape[1]
    c_pad = wot.shape[1]

    # Batch tile: multiple of 8 sublanes, capped so double-buffered tiles fit
    # comfortably within every generation's scoped VMEM (incl. v7x / v5e).
    TB = min(tb, _round_up(B, 8))
    B_pad = _round_up(B, TB)

    xb = x.astype(jnp.bfloat16)            # halve HBM traffic for the dominant stream
    if B_pad != B:
        xb = jnp.pad(xb, ((0, B_pad - B), (0, 0)))

    grid = (B_pad // TB,)
    kernel = functools.partial(_classifier_kernel, hidden_size=H)

    out = pl.pallas_call(
        kernel,
        out_shape=jax.ShapeDtypeStruct((B_pad, c_pad), jnp.float32),
        grid_spec=pltpu.PrefetchScalarGridSpec(
            num_scalar_prefetch=0,
            grid=grid,
            in_specs=[
                pl.BlockSpec((TB, E), lambda i: (i, 0)),         # x tile (pipelined)
                pl.BlockSpec((E, h_pad), lambda i: (0, 0)),      # w1t  (resident)
                pl.BlockSpec((1, h_pad), lambda i: (0, 0)),      # b1
                pl.BlockSpec((1, h_pad), lambda i: (0, 0)),      # gamma
                pl.BlockSpec((1, h_pad), lambda i: (0, 0)),      # beta
                pl.BlockSpec((h_pad, c_pad), lambda i: (0, 0)),  # wot
                pl.BlockSpec((1, c_pad), lambda i: (0, 0)),      # bo
            ],
            out_specs=pl.BlockSpec((TB, c_pad), lambda i: (i, 0)),  # lane-dense logits
        ),
        compiler_params=pltpu.CompilerParams(
            dimension_semantics=("parallel",),      # megacore sharding on v7x
            vmem_limit_bytes=32 * 1024 * 1024,       # explicit; safe on v5e/v6e/v7x
        ),
    )(xb, w1t, b1, gamma, beta, wot, bo)

    return out[:B, :C]


def init_params(key, embedding_size, hidden_size, n_classes):
    """Synthetic init matching Classifier.__init__ shapes (nlayers=1, representation=None).
    Mimics PyTorch Linear default U(-1/sqrt(fan_in), 1/sqrt(fan_in)); LayerNorm ones/zeros."""
    k1, k2, k3, k4 = jax.random.split(key, 4)
    bnd1 = 1.0 / jnp.sqrt(embedding_size)
    bndo = 1.0 / jnp.sqrt(hidden_size)
    return {
        "w1": jax.random.uniform(k1, (hidden_size, embedding_size),
                                 jnp.float32, -bnd1, bnd1),
        "b1": jax.random.uniform(k2, (hidden_size,), jnp.float32, -bnd1, bnd1),
        "ln_gamma": jnp.ones((hidden_size,), jnp.float32),
        "ln_beta": jnp.zeros((hidden_size,), jnp.float32),
        "wo": jax.random.uniform(k3, (n_classes, hidden_size),
                                 jnp.float32, -bndo, bndo),
        "bo": jax.random.uniform(k4, (n_classes,), jnp.float32, -bndo, bndo),
    }


def reference_forward(x, params, *, matmul_dtype=jnp.float32):
    """Pure-JAX reference of the PyTorch eval-mode forward.
    matmul_dtype=bfloat16 mirrors the kernel's bf16 feed of the first matmul."""
    xr = x.astype(matmul_dtype).astype(jnp.float32)
    w1r = params["w1"].astype(matmul_dtype).astype(jnp.float32)
    h = xr @ w1r.T + params["b1"]
    h = jnp.maximum(h, 0.0)
    mean = jnp.mean(h, axis=-1, keepdims=True)
    var = jnp.mean((h - mean) ** 2, axis=-1, keepdims=True)
    h = (h - mean) / jnp.sqrt(var + LN_EPS)
    h = h * params["ln_gamma"] + params["ln_beta"]
    return h @ params["wo"].T + params["bo"]


if __name__ == "__main__":
    # Small shapes consistent with Classifier defaults (scaled down):
    #   embedding_size=256 (default 768), hidden_size=5, n_classes=3.
    # B=300 (not a tile multiple) + tb=128 exercises batch padding and a 3-step
    # pipelined grid.
    B, E, H, C = 300, 256, 5, 3

    key = jax.random.PRNGKey(0)
    kx, kp = jax.random.split(key)
    x = jax.random.normal(kx, (B, E), jnp.float32)
    params = init_params(kp, E, H, C)

    prepped = prep_params(params)                 # one-time weight prep (hoisted)
    logits = classifier_forward(x, prepped, tb=128)
    jax.block_until_ready(logits)

    assert logits.shape == (B, C)
    # Tight check vs a reference that applies the same bf16 rounding to the first matmul.
    ref_bf16 = reference_forward(x, params, matmul_dtype=jnp.bfloat16)
    assert jnp.allclose(logits, ref_bf16, atol=1e-4, rtol=1e-4), "mismatch vs bf16-matched ref"
    # Loose sanity check vs the pure-f32 PyTorch-semantics reference.
    ref_f32 = reference_forward(x, params)
    assert jnp.allclose(logits, ref_f32, atol=5e-2, rtol=5e-2), "mismatch vs f32 reference"

    # TODO(synk): training-mode dropout (p=0.1) omitted — eval-mode forward is identity.
    print("KERNEL_OK")
</pallas_src>

<mosaic_0001>
module attributes {stable_mosaic.version = 11 : i64} {
  func.func @_classifier_kernel(%arg0: i32, %arg1: memref<128x256xbf16, #tpu.memory_space<vmem>>, %arg2: memref<256x128xbf16, #tpu.memory_space<vmem>>, %arg3: memref<1x128xf32, #tpu.memory_space<vmem>>, %arg4: memref<1x128xf32, #tpu.memory_space<vmem>>, %arg5: memref<1x128xf32, #tpu.memory_space<vmem>>, %arg6: memref<128x128xf32, #tpu.memory_space<vmem>>, %arg7: memref<1x128xf32, #tpu.memory_space<vmem>>, %arg8: memref<128x128xf32, #tpu.memory_space<vmem>>) attributes {dimension_semantics = [#tpu.dimension_semantics<parallel>], iteration_bounds = array<i64: 3>, scalar_prefetch = 0 : i64, scratch_operands = 0 : i64, tpu.core_type = #tpu.core_type<tc>, window_params = [{transform_indices = @transform_0, window_bounds = array<i64: 128, 256>}, {pipeline_mode = #tpu.pipeline_mode<synchronous>, transform_indices = @transform_1, window_bounds = array<i64: 256, 128>}, {pipeline_mode = #tpu.pipeline_mode<synchronous>, transform_indices = @transform_2, window_bounds = array<i64: 1, 128>}, {pipeline_mode = #tpu.pipeline_mode<synchronous>, transform_indices = @transform_3, window_bounds = array<i64: 1, 128>}, {pipeline_mode = #tpu.pipeline_mode<synchronous>, transform_indices = @transform_4, window_bounds = array<i64: 1, 128>}, {pipeline_mode = #tpu.pipeline_mode<synchronous>, transform_indices = @transform_5, window_bounds = array<i64: 128, 128>}, {pipeline_mode = #tpu.pipeline_mode<synchronous>, transform_indices = @transform_6, window_bounds = array<i64: 1, 128>}, {transform_indices = @transform_7, window_bounds = array<i64: 128, 128>}]} {
    %c0 = arith.constant 0 : index
    %c0_0 = arith.constant 0 : index
    %0 = vector.load %arg1[%c0, %c0_0] : memref<128x256xbf16, #tpu.memory_space<vmem>>, vector<128x256xbf16>
    %c0_1 = arith.constant 0 : index
    %c0_2 = arith.constant 0 : index
    %1 = vector.load %arg2[%c0_1, %c0_2] : memref<256x128xbf16, #tpu.memory_space<vmem>>, vector<256x128xbf16>
    %cst = arith.constant dense<0.000000e+00> : vector<128x128xf32>
    %2 = tpu.matmul %0, %1, %cst {dimension_numbers = #tpu.dot_dimension_numbers<[1], [0], [0], [1], [0, 0, 1, 1], [], []>} : vector<128x256xbf16>, vector<256x128xbf16>, vector<128x128xf32> -> vector<128x128xf32>
    %c0_3 = arith.constant 0 : index
    %c0_4 = arith.constant 0 : index
    %3 = vector.load %arg3[%c0_3, %c0_4] : memref<1x128xf32, #tpu.memory_space<vmem>>, vector<1x128xf32>
    %4 = vector.broadcast %3 : vector<1x128xf32> to vector<128x128xf32>
    %5 = arith.addf %2, %4 : vector<128x128xf32>
    %cst_5 = arith.constant 0.000000e+00 : f32
    %6 = vector.broadcast %cst_5 : f32 to vector<128x128xf32>
    %7 = arith.maximumf %5, %6 : vector<128x128xf32>
    %8 = tpu.iota {dimensions = array<i32: 1>} : vector<1x128xi32>
    %c5_i32 = arith.constant 5 : i32
    %9 = vector.broadcast %c5_i32 : i32 to vector<1x128xi32>
    %10 = arith.cmpi slt, %8, %9 : vector<1x128xi32>
    %11 = arith.extui %10 : vector<1x128xi1> to vector<1x128xi32>
    %12 = arith.sitofp %11 : vector<1x128xi32> to vector<1x128xf32>
    %cst_6 = arith.constant dense<0.000000e+00> : vector<128xf32>
    %13 = vector.multi_reduction <add>, %7, %cst_6 [1] : vector<128x128xf32> to vector<128xf32>
    %14 = vector.shape_cast %13 : vector<128xf32> to vector<128x1xf32>
    %cst_7 = arith.constant 2.000000e-01 : f32
    %15 = vector.broadcast %cst_7 : f32 to vector<128x1xf32>
    %16 = arith.mulf %14, %15 : vector<128x1xf32>
    %17 = vector.broadcast %16 : vector<128x1xf32> to vector<128x128xf32>
    %18 = arith.subf %7, %17 : vector<128x128xf32>
    %19 = vector.broadcast %12 : vector<1x128xf32> to vector<128x128xf32>
    %20 = arith.mulf %18, %19 : vector<128x128xf32>
    %21 = arith.mulf %20, %20 : vector<128x128xf32>
    %cst_8 = arith.constant dense<0.000000e+00> : vector<128xf32>
    %22 = vector.multi_reduction <add>, %21, %cst_8 [1] : vector<128x128xf32> to vector<128xf32>
    %23 = vector.shape_cast %22 : vector<128xf32> to vector<128x1xf32>
    %cst_9 = arith.constant 2.000000e-01 : f32
    %24 = vector.broadcast %cst_9 : f32 to vector<128x1xf32>
    %25 = arith.mulf %23, %24 : vector<128x1xf32>
    %cst_10 = arith.constant 9.99999974E-6 : f32
    %26 = vector.broadcast %cst_10 : f32 to vector<128x1xf32>
    %27 = arith.addf %25, %26 : vector<128x1xf32>
    %28 = math.rsqrt %27 : vector<128x1xf32>
    %29 = vector.broadcast %28 : vector<128x1xf32> to vector<128x128xf32>
    %30 = arith.mulf %20, %29 : vector<128x128xf32>
    %c0_11 = arith.constant 0 : index
    %c0_12 = arith.constant 0 : index
    %31 = vector.load %arg4[%c0_11, %c0_12] : memref<1x128xf32, #tpu.memory_space<vmem>>, vector<1x128xf32>
    %32 = vector.broadcast %31 : vector<1x128xf32> to vector<128x128xf32>
    %33 = arith.mulf %30, %32 : vector<128x128xf32>
    %c0_13 = arith.constant 0 : index
    %c0_14 = arith.constant 0 : index
    %34 = vector.load %arg5[%c0_13, %c0_14] : memref<1x128xf32, #tpu.memory_space<vmem>>, vector<1x128xf32>
    %35 = vector.broadcast %34 : vector<1x128xf32> to vector<128x128xf32>
    %36 = arith.addf %33, %35 : vector<128x128xf32>
    %c0_15 = arith.constant 0 : index
    %c0_16 = arith.constant 0 : index
    %37 = vector.load %arg6[%c0_15, %c0_16] : memref<128x128xf32, #tpu.memory_space<vmem>>, vector<128x128xf32>
    %cst_17 = arith.constant dense<0.000000e+00> : vector<128x128xf32>
    %38 = tpu.matmul %36, %37, %cst_17 {dimension_numbers = #tpu.dot_dimension_numbers<[1], [0], [0], [1], [0, 0, 1, 1], [], []>} : vector<128x128xf32>, vector<128x128xf32>, vector<128x128xf32> -> vector<128x128xf32>
    %c0_18 = arith.constant 0 : index
    %c0_19 = arith.constant 0 : index
    %39 = vector.load %arg7[%c0_18, %c0_19] : memref<1x128xf32, #tpu.memory_space<vmem>>, vector<1x128xf32>
    %40 = vector.broadcast %39 : vector<1x128xf32> to vector<128x128xf32>
    %41 = arith.addf %38, %40 : vector<128x128xf32>
    %c0_20 = arith.constant 0 : index
    %c0_21 = arith.constant 0 : index
    %42 = vector.load %arg8[%c0_20, %c0_21] : memref<128x128xf32, #tpu.memory_space<vmem>>, vector<128x128xf32>
    tpu.vector_store %arg8[%c0_20, %c0_21], %41 {strides = array<i32>} : memref<128x128xf32, #tpu.memory_space<vmem>>, vector<128x128xf32>,
    return
  }
  func.func @transform_0(%arg0: i32) -> (i32, i32) {
    %c0_i32 = arith.constant 0 : i32
    %c0_i32_0 = arith.constant 0 : i32
    return %arg0, %c0_i32 : i32, i32
  }
  func.func @transform_1(%arg0: i32) -> (i32, i32) {
    %c0_i32 = arith.constant 0 : i32
    %c0_i32_0 = arith.constant 0 : i32
    %c0_i32_1 = arith.constant 0 : i32
    return %c0_i32, %c0_i32_0 : i32, i32
  }
  func.func @transform_2(%arg0: i32) -> (i32, i32) {
    %c0_i32 = arith.constant 0 : i32
    %c0_i32_0 = arith.constant 0 : i32
    %c0_i32_1 = arith.constant 0 : i32
    return %c0_i32, %c0_i32_0 : i32, i32
  }
  func.func @transform_3(%arg0: i32) -> (i32, i32) {
    %c0_i32 = arith.constant 0 : i32
    %c0_i32_0 = arith.constant 0 : i32
    %c0_i32_1 = arith.constant 0 : i32
    return %c0_i32, %c0_i32_0 : i32, i32
  }
  func.func @transform_4(%arg0: i32) -> (i32, i32) {
    %c0_i32 = arith.constant 0 : i32
    %c0_i32_0 = arith.constant 0 : i32
    %c0_i32_1 = arith.constant 0 : i32
    return %c0_i32, %c0_i32_0 : i32, i32
  }
  func.func @transform_5(%arg0: i32) -> (i32, i32) {
    %c0_i32 = arith.constant 0 : i32
    %c0_i32_0 = arith.constant 0 : i32
    %c0_i32_1 = arith.constant 0 : i32
    return %c0_i32, %c0_i32_0 : i32, i32
  }
  func.func @transform_6(%arg0: i32) -> (i32, i32) {
    %c0_i32 = arith.constant 0 : i32
    %c0_i32_0 = arith.constant 0 : i32
    %c0_i32_1 = arith.constant 0 : i32
    return %c0_i32, %c0_i32_0 : i32, i32
  }
  func.func @transform_7(%arg0: i32) -> (i32, i32) {
    %c0_i32 = arith.constant 0 : i32
    %c0_i32_0 = arith.constant 0 : i32
    return %arg0, %c0_i32 : i32, i32
  }
}

</mosaic_0001>

<bundles_post_ra>
// kernel: tpu_custom_call.1
= control target key start
LH: loop header
LB: loop body
LE: loop exit
PB: predicated region body
PF: predicated region fallthrough
CT: control target
= control target key end

     0   :  { %s2274_s0 = inlined_call_operand.hbm [shape: bf16[384,256], index: 0, kind: input, shape index: {}]   ;;  %s2275_s1 = inlined_call_operand.hbm [shape: bf16[256,128], index: 1, kind: input, shape index: {}]   ;;  %s2276_s2 = inlined_call_operand.vmem [shape: f32[1,128], index: 2, kind: input, shape index: {}]   ;;  %s2277_s3 = inlined_call_operand.vmem [shape: f32[1,128], index: 3, kind: input, shape index: {}]   ;;  %s2278_s4 = inlined_call_operand.vmem [shape: f32[1,128], index: 4, kind: input, shape index: {}]   ;;  %s2279_s5 = inlined_call_operand.hbm [shape: f32[128,128], index: 5, kind: input, shape index: {}]   ;;  %s2280_s6 = inlined_call_operand.vmem [shape: f32[1,128], index: 6, kind: input, shape index: {}]   ;;  %s2281_s7 = inlined_call_operand.hbm [shape: f32[384,128], index: 7, kind: output, shape index: {}]  }
   0x1   :  { %2288 = sst [smem:[#allocation12_spill]] %s2275_s1 }
   0x2   :  { %12 = vsyncpa [#allocation3], 0 }
   0x3   :  { %14 = vsyncpa [#allocation3 + $0x1], 0 }
   0x4   :  { %15 = vsyncpa [#allocation6], 0 }
   0x5   :  { %16 = vsyncpa [#allocation4], 0 }
   0x6   :  { %18 = vsyncpa [#allocation4 + $0x1], 0  ;;  %s1765_s24 = smov 0   ;;  %s1767_s25 = smov 0  }
   0x7   :  { %s1769_s26 = smov 0   ;;  %s1771_s27 = smov 0  }
   0x8 LB: > { %s1786_s28 = sadd.s32 4294967295, %s1712_s27   ;;  %s1207_s29 = sadd.s32 4294967294, %s1712_s27   ;;  %s1712_s27 = sphi %s1771_s27, %s2308_s27   ;;  %s1708_s26 = sphi %s1769_s26, %s2307_s26   ;;  %s1704_s25 = sphi %s1767_s25, %s2306_s25   ;;  %s1700_s24 = sphi %s1765_s24, %s2305_s24  }
   0x9   : > { %p44_p0 = scmp.ne.s32.totalorder %s1704_s25, %s1700_s24  ;;  %p2282_p1 = scmp.eq.s32.totalorder %s1786_s28, 0 }
   0xa   : > { %p200_p3 = scmp.eq.s32.totalorder %s1207_s29, 2  ;;  %p1208_p5 = scmp.ge.s32.totalorder %s1712_s27, 1 }
   0xb   : > { %p1795_p4 = por %p2282_p1, %p44_p0  ;;  %p207_p7 = scmp.lt.s32.totalorder %s1712_s27, 4 }
   0xc   : > { %p1800_p6 = por %p200_p3, %p44_p0  ;;  %s1714_s10 = smov [#allocation5]  }
   0xd   : > { %s2289_s30 = scalar_select %p1795_p4, 1, 0 }
   0xe   : > { %s2290_s8 = scalar_select %p1800_p6, 1, 0 }
   0xf   : > { %p1805_p8 = pnand %p1208_p5, %p207_p7  ;;  %s219_s11 = sshll.u32 %s1714_s10, 4  ;;  %s220_s11 = int_to_ptr.vmem [resolvable:$true] %s219_s11 }
  0x10   : > { %s1715_s13 = smov [#allocation7]   ;;  %s1575_s15 = scalar_lea.vmem %s220_s11, 2048 }
  0x11   : > { %s2291_s9 = scalar_select %p1805_p8, 1, 0 }
  0x12   : > { %p1430_p9 = pneg %p1805_p8  ;;  %s241_s14 = sshll.u32 %s1715_s13, 4  ;;  %s242_s14 = int_to_ptr.vmem [resolvable:$true] %s241_s14 }
  0x13   : > { %p1576_p12 = scmp.ne.s32.totalorder %s220_s11, %s1575_s15  ;;  %p1583_p3 = scmp.lt.s32.totalorder %s220_s11, %s220_s11 }
  0x14   : > { %p1813_p10 = pnand %p1430_p9, %p2282_p1  ;;  %p1584_p5 = scmp.lt.s32.totalorder %s1575_s15, %s1575_s15 }
  0x16   : > { %p1566_p11 = pneg %p1813_p10  ;;  %p1585_p7 = por %p1584_p5, %p1583_p3 }
  0x18   : > { %p1578_p13 = pnand %p1576_p12, %p1566_p11 }
  0x1a   : > { %p1579_p0 = pneg %p1578_p13 }
  0x1c   : > { %p1586_p9 = pnand %p1585_p7, %p1579_p0 }
  0x1e   : > { %1589 = shalt.err (!%p1586_p9)
}
  0x1f   : > { %s1716_s16 = smov 64   ;;  %s1717_s17 = smov 4  }
  0x20   : > { %s2293_s1 = sld [smem:[#allocation12_spill]]  ;;  %s1601_s20 = scalar_lea.vmem %s242_s14, 2048 }
  0x21   : > { %p1602_p1 = scmp.ne.s32.totalorder %s242_s14, %s1601_s20  ;;  %p1609_p2 = scmp.lt.s32.totalorder %s242_s14, %s242_s14 }
  0x22   : > { %p1610_p6 = scmp.lt.s32.totalorder %s1601_s20, %s1601_s20 }
  0x23   : > { %p1604_p12 = pnand %p1602_p1, %p1566_p11 }
  0x24   : > { %p1611_p3 = por %p1610_p6, %p1609_p2 }
  0x25   : > { %p1605_p13 = pneg %p1604_p12 }
  0x26   : > { %1433 = dma.hbm_to_vmem [thread:$0]  (!%p1813_p10), %s2293_s1, 2048, %s220_s11, [#allocation6], %s1716_s16, %s1716_s16, %s1717_s17  }
  0x27   : > { %p1612_p0 = pnand %p1611_p3, %p1605_p13 }
  0x29   : > { %1615 = shalt.err (!%p1612_p0)
}
  0x2a   : > { %s2283_s21 = smov 128   ;;  %s2284_s22 = smov 8  }
  0x2b   : > { %1436 = dma.hbm_to_vmem [thread:$0]  (!%p1813_p10), %s2279_s5, 2048, %s242_s14, [#allocation6], %s2283_s21, %s2283_s21, %s2284_s22  }
  0x2c   : > { %s1839_s10 = sadd.s32 1, %s1712_s27   ;;  %s31_s13 = sadd.s32 1, %s1708_s26 }
  0x2d   : > { %s28_s11 = ssub.s32 %s1712_s27, %s1839_s10  ;;  %p38_p2 = scmp.ne.s32.totalorder %s1708_s26, %s1704_s25 }
  0x2e   : > { %p29_p1 = scmp.eq.s32.totalorder %s28_s11, 0  ;;  %p39_p6 = scmp.eq.s32.totalorder %s1712_s27, 0 }
  0x2f   : > { %p2294_p5 = scmp.eq.s32.totalorder %s1786_s28, 2  ;;  %p1447_p9 = scmp.lt.s32.totalorder %s1712_s27, 3 }
  0x30   : > { %s1848_s15 = scalar_select %p29_p1, %s1708_s26, %s31_s13  }
  0x31   : > { %p40_p11 = por %p39_p6, %p38_p2  ;;  %p1852_p7 = por %p2294_p5, %p38_p2 }
  0x32   : > { %s258_s16 = sand.u32 1, %s1708_s26   ;;  %s1264_s14 = sshll.u32 %s1712_s27, 11 }
  0x33   : > { %s2295_s12 = scalar_select %p1852_p7, 1, 0 }
  0x34   : > { %s1212_s17 = sshll.u32 %s258_s16, 7  ;;  %s1862_s20 = scalar_lea.hbm %s2274_s0, %s1264_s14 }
  0x35   : > { %s262_s23 = scalar_lea.vmem [#allocation2], %s1212_s17  ;;  %p1866_p10 = pnand %p1447_p9, %p40_p11 }
  0x36   : > { %s270_s29 = sshll.u32 %s262_s23, 4  ;;  %s1870_s13 = scalar_lea.sflag [#allocation3], %s258_s16  ;;  %s1864_s29 = int_to_ptr.vmem [resolvable:$true] %s270_s29 }
  0x37   : > { %s1616_s21 = scalar_lea.hbm %s1862_s20, 2048  ;;  %p1618_p13 = pneg %p1866_p10 }
  0x38   : > { %p1617_p12 = scmp.ne.s32.totalorder %s1862_s20, %s1616_s21  ;;  %s1621_s17 = scalar_lea.hbm %s2274_s0, 6144 }
  0x39   : > { %p1622_p1 = scmp.lt.s32.totalorder %s1862_s20, %s2274_s0  ;;  %p1623_p2 = scmp.lt.s32.totalorder %s1621_s17, %s1616_s21 }
  0x3a   : > { %p1619_p3 = pnand %p1618_p13, %p1617_p12 }
  0x3b   : > { %p1624_p6 = por %p1623_p2, %p1622_p1 }
  0x3c   : > { %p1620_p0 = pneg %p1619_p3 }
  0x3e   : > { %p1625_p11 = pnand %p1624_p6, %p1620_p0 }
  0x40   : > { %1628 = shalt.err (!%p1625_p11)
}
  0x41   : > { %s1629_s16 = scalar_lea.vmem %s1864_s29, 2048  ;;  %s1720_s22 = smov [#allocation2]  }
  0x42   : > { %p1630_p5 = scmp.ne.s32.totalorder %s1864_s29, %s1629_s16  ;;  %s1634_s1 = sshll.u32 %s1720_s22, 4  ;;  %s1635_s1 = int_to_ptr.vmem [resolvable:$false] %s1634_s1 }
  0x43   : > { %s1636_s14 = scalar_lea.vmem %s1635_s1, 4096  ;;  %p1637_p3 = scmp.lt.s32.totalorder %s1864_s29, %s1635_s1 }
  0x44   : > { %p1632_p9 = pnand %p1630_p5, %p1618_p13  ;;  %p1638_p7 = scmp.lt.s32.totalorder %s1636_s14, %s1629_s16 }
  0x46   : > { %p1633_p12 = pneg %p1632_p9  ;;  %p1639_p4 = por %p1638_p7, %p1637_p3 }
  0x48   : > { %p1640_p8 = pnand %p1639_p4, %p1633_p12 }
  0x4a   : > { %1643 = shalt.err (!%p1640_p8)
}
  0x4b   : > { %s2297_s21 = smov 8   ;;  %s2298_s18 = smov 128  }
  0x4c   : > { %1440 = dma.hbm_to_vmem [thread:$0]  (!%p1866_p10), %s1862_s20, 2048, %s1864_s29, %s1870_s13, %s2298_s18, %s2298_s18, %s2297_s21  }
  0x4d   : > { %p2299_p13 = scmp.ne.s32.totalorder %s2291_s9, 0 }
  0x4e   : > { %s1897_s22 = sand.u32 (!%p2299_p13), 1, %s1704_s25   ;;  %p2300_p4 = scmp.ne.s32.totalorder (!%p2299_p13), %s2289_s30, 0 }
  0x4f   : > { %282 = sbr.rel (%p2299_p13) target bundleno = 901 (0x385), region = 48  ;;  %s1217_s1 = sshll.u32 (!%p2299_p13), %s1897_s22, 7 }
  0x50   : > { %s285_s17 = scalar_lea.sflag (!%p2299_p13), [#allocation3], %s1897_s22  ;;  %s1903_s11 = scalar_lea.vmem (!%p2299_p13), [#allocation2], %s1217_s1 }
  0x54   : > { %1687 = dma.done.wait (%p2300_p4), %s285_s17, 2048  }
  0x55   : > { %1689 = vsyncadd (%p2300_p4), %s285_s17, 4294965248  ;;  %p2301_p8 = scmp.eq.s32.totalorder %s1786_s28, 0 }
  0x57   : > { %1691 = dma.done.wait (%p2301_p8), [#allocation6], 4096   ;;  %p2302_p7 = pmov %p2301_p8 }
  0x58   : > { %v1492_v0 = vld [vmem:[#allocation5 + $0x78] sm:$0xff]   ;;  %v1494_v2 = vld [vmem:[#allocation5 + $0x70] sm:$0xff]   ;;  %v1496_v4 = vld [vmem:[#allocation5 + $0x68] sm:$0xff]   ;;  %s2207_s14 = scalar_lea.vmem [#allocation8], %s1217_s1  ;;  %s1265_s21 = sshll.u32 %s1786_s28, 11 }
  0x59   : > { %1693 = vsyncadd (%p2302_p7), [#allocation6], 4294963200  ;;  %v1493_v1 = vld [vmem:[#allocation5 + $0x38] sm:$0xff]   ;;  %1266 = vmatprep.subr.bf16.mxu0 %v1492_v0  ;;  %v1495_v3 = vld [vmem:[#allocation5 + $0x30] sm:$0xff]   ;;  %s1115_s18 = sshll.u32 %s2207_s14, 4  ;;  %s1102_s30 = scalar_lea.sflag [#allocation4], %s1897_s22  ;;  %s2230_s18 = int_to_ptr.vmem [resolvable:$true] %s1115_s18 }
  0x5a   : > { %1267 = vmatpush3.bf16.msra.mxu0 %v1493_v1  ;;  %v1497_v5 = vld [vmem:[#allocation5 + $0x28] sm:$0xff]   ;;  %v1498_v6 = vld [vmem:[#allocation5 + $0x60] sm:$0xff]   ;;  %v1500_v8 = vld [vmem:[#allocation5 + $0x58] sm:$0xff]   ;;  %s1644_s9 = scalar_lea.vmem %s2230_s18, 2048  ;;  %p2303_p0 = scmp.ne.s32.totalorder %s2295_s12, 0 }
  0x5b   : > { %1268 = vmatprep.subr.bf16.mxu0 %v1494_v2  ;;  %v1499_v7 = vld [vmem:[#allocation5 + $0x20] sm:$0xff]   ;;  %v1501_v9 = vld [vmem:[#allocation5 + $0x18] sm:$0xff]   ;;  %v1502_v10 = vld [vmem:[#allocation5 + $0x50] sm:$0xff]   ;;  %p1645_p10 = scmp.ne.s32.totalorder %s2230_s18, %s1644_s9  ;;  %s1722_s28 = smov [#allocation8]  }
  0x5c   : > { %v1510_v11 = vld [vmem:[%s1903_s11 + $0x4] ss:$8 sps:$4 sm:$0xff]   ;;  %v1503_v12 = vld [vmem:[#allocation5 + $0x10] sm:$0xff]   ;;  %v1508_v17 = vld [vmem:[%s1903_s11] ss:$8 sps:$4 sm:$0xff]   ;;  %s1648_s20 = sshll.u32 %s1722_s28, 4  ;;  %s1649_s20 = int_to_ptr.vmem [resolvable:$false] %s1648_s20 }
  0x5d   : > { %593 = vmatprep.mubr.bf16.mxu0 %v1510_v11  ;;  %v1504_v13 = vld [vmem:[#allocation5 + $0x48] sm:$0xff]   ;;  %v1506_v15 = vld [vmem:[#allocation5 + $0x40] sm:$0xff]   ;;  %v1511_v18 = vld [vmem:[%s1903_s11 + $0x14] ss:$8 sps:$4 sm:$0xff]   ;;  %p1646_p1 = pnand %p1645_p10, %p2303_p0  ;;  %s1650_s29 = scalar_lea.vmem %s1649_s20, 4096 }
  0x5e   : > { %1269 = vmatpush3.bf16.msra.mxu0 %v1495_v3  ;;  %v1505_v14 = vld [vmem:[#allocation5 + $0x8] sm:$0xff]   ;;  %v1507_v16 = vld [vmem:[#allocation5] sm:$0xff]   ;;  %v1513_v19 = vld [vmem:[%s1903_s11 + $0x10] ss:$8 sps:$4 sm:$0xff]   ;;  %p1651_p6 = scmp.lt.s32.totalorder %s2230_s18, %s1649_s20  ;;  %p1652_p11 = scmp.lt.s32.totalorder %s1650_s29, %s1644_s9 }
  0x5f   : > { %1270 = vmatprep.subr.bf16.mxu0 %v1496_v4  ;;  %v1514_v20 = vld [vmem:[%s1903_s11 + $0x24] ss:$8 sps:$4 sm:$0xff]   ;;  %v1516_v21 = vld [vmem:[%s1903_s11 + $0x20] ss:$8 sps:$4 sm:$0xff]   ;;  %v1517_v22 = vld [vmem:[%s1903_s11 + $0x34] ss:$8 sps:$4 sm:$0xff]   ;;  %p1647_p2 = pneg %p1646_p1 }
  0x60   : > { %v1519_v23 = vld [vmem:[%s1903_s11 + $0x30] ss:$8 sps:$4 sm:$0xff]   ;;  %v1520_v24 = vld [vmem:[%s1903_s11 + $0x44] ss:$8 sps:$4 sm:$0xff]   ;;  %v1522_v25 = vld [vmem:[%s1903_s11 + $0x40] ss:$8 sps:$4 sm:$0xff]   ;;  %p1653_p5 = por %p1652_p11, %p1651_p6 }
  0x61   : > { %v1523_v26 = vld [vmem:[%s1903_s11 + $0x54] ss:$8 sps:$4 sm:$0xff]   ;;  %v1525_v27 = vld [vmem:[%s1903_s11 + $0x50] ss:$8 sps:$4 sm:$0xff]   ;;  %v1526_v28 = vld [vmem:[%s1903_s11 + $0x64] ss:$8 sps:$4 sm:$0xff]  }
  0x62   : > { %1271 = vmatpush3.bf16.msra.mxu0 %v1497_v5  ;;  %v1528_v29 = vld [vmem:[%s1903_s11 + $0x60] ss:$8 sps:$4 sm:$0xff]   ;;  %v1529_v30 = vld [vmem:[%s1903_s11 + $0x74] ss:$8 sps:$4 sm:$0xff]   ;;  %v1531_v31 = vld [vmem:[%s1903_s11 + $0x70] ss:$8 sps:$4 sm:$0xff]   ;;  %s2228_s11 = scalar_lea.hbm %s2281_s7, %s1265_s21  ;;  %p1654_p9 = pnand %p1653_p5, %p1647_p2 }
  0x63   : > { %1272 = vmatprep.subr.bf16.mxu0 %v1498_v6  ;;  %v1932_v34 = vld [vmem:[%s2276_s2] ss:$0 sm:$0xff] }
  0x66   : > { %1273 = vmatpush3.bf16.msra.mxu0 %v1499_v7 }
  0x67   : > { %1274 = vmatprep.subr.bf16.mxu0 %v1500_v8 }
  0x6a   : > { %1275 = vmatpush3.bf16.msra.mxu0 %v1501_v9 }
  0x6b   : > { %1276 = vmatprep.subr.bf16.mxu0 %v1502_v10 }
  0x6e   : > { %1277 = vmatpush3.bf16.msra.mxu0 %v1503_v12 }
  0x6f   : > { %1278 = vmatprep.subr.bf16.mxu0 %v1504_v13 }
  0x72   : > { %1279 = vmatpush3.bf16.msra.mxu0 %v1505_v14 }
  0x73   : > { %1280 = vmatprep.subr.bf16.mxu0 %v1506_v15 }
  0x76   : > { %1281 = vmatpush3.bf16.msra.mxu0 %v1507_v16 }
  0x79   : > { %594 = vmatmul.mubr.bf16.vlgmr.msra.gmra.mxu0 %v1508_v17 }
  0x7a   : > { %601 = vmatprep.mubr.bf16.mxu0 %v1511_v18 }
  0x81   : > { %602 = vmatmul.mubr.bf16.gmra.mxu0 %v1513_v19 }
  0x82   : > { %609 = vmatprep.mubr.bf16.mxu0 %v1514_v20 }
  0x89   : > { %610 = vmatmul.mubr.bf16.gmra.mxu0 %v1516_v21 }
  0x8a   : > { %617 = vmatprep.mubr.bf16.mxu0 %v1517_v22 }
  0x91   : > { %618 = vmatmul.mubr.bf16.gmra.mxu0 %v1519_v23 }
  0x92   : > { %625 = vmatprep.mubr.bf16.mxu0 %v1520_v24 }
  0x99   : > { %626 = vmatmul.mubr.bf16.gmra.mxu0 %v1522_v25 }
  0x9a   : > { %633 = vmatprep.mubr.bf16.mxu0 %v1523_v26 }
  0xa1   : > { %634 = vmatmul.mubr.bf16.gmra.mxu0 %v1525_v27 }
  0xa2   : > { %641 = vmatprep.mubr.bf16.mxu0 %v1526_v28 }
  0xa9   : > { %642 = vmatmul.mubr.bf16.gmra.mxu0 %v1528_v29 }
  0xaa   : > { %649 = vmatprep.mubr.bf16.mxu0 %v1529_v30 }
  0xb1   : > { %650 = vmatmul.mubr.bf16.gmra.mxu0 %v1531_v31 }
 0x139   : > { %v1282_v32 = vpop.f32.mrf.mxu0 }
 0x13b   : > { %v1283_v33 = vpop.f32.mrf.mxu0 }
 0x13c   : > { %v1284_v35 = vadd.f32 %v1283_v33, %v1282_v32 }
 0x13d   : > { %v1285_v36 = vpop.f32.mrf.mxu0 }
 0x13e   : > { %v1935_v37 = vadd.f32 %v1284_v35, %v1932_v34 }
 0x13f   : > { %v1286_v38 = vpop.f32.mrf.mxu0 }
 0x140   : > { %v1287_v39 = vadd.f32 %v1286_v38, %v1285_v36  ;;  %v658_v40 = vmax.f32 %v1935_v37, 0.0 }
 0x141   : > { %v1288_v41 = vpop.f32.mrf.mxu0 }
 0x142   : > { %679 = vadd.xlane.f32.xlu0 %v658_v40  ;;  %v1941_v42 = vadd.f32 %v1287_v39, %v1932_v34 }
 0x143   : > { %v1289_v43 = vpop.f32.mrf.mxu0 }
 0x144   : > { %v1290_v44 = vadd.f32 %v1289_v43, %v1288_v41  ;;  %v659_v45 = vmax.f32 %v1941_v42, 0.0 }
 0x145   : > { %v1291_v46 = vpop.f32.mrf.mxu0 }
 0x146   : > { %681 = vadd.xlane.f32.xlu0 %v659_v45  ;;  %v1947_v47 = vadd.f32 %v1290_v44, %v1932_v34 }
 0x147   : > { %v1292_v48 = vpop.f32.mrf.mxu0 }
 0x148   : > { %v1293_v49 = vadd.f32 %v1292_v48, %v1291_v46  ;;  %v660_v50 = vmax.f32 %v1947_v47, 0.0 }
 0x149   : > { %v1294_v51 = vpop.f32.mrf.mxu0 }
 0x14a   : > { %683 = vadd.xlane.f32.xlu1 %v660_v50  ;;  %v1953_v52 = vadd.f32 %v1293_v49, %v1932_v34 }
 0x14b   : > { %v1295_v53 = vpop.f32.mrf.mxu0 }
 0x14c   : > { %v1296_v54 = vadd.f32 %v1295_v53, %v1294_v51  ;;  %v661_v55 = vmax.f32 %v1953_v52, 0.0  ;;  %v929_v52 = vld [vmem:[#allocation7 + $0x60] sm:$0xff] }
 0x14d   : > { %v1297_v56 = vpop.f32.mrf.mxu0 }
 0x14e   : > { %685 = vadd.xlane.f32.xlu1 %v661_v55  ;;  %v1959_v57 = vadd.f32 %v1296_v54, %v1932_v34 }
 0x14f   : > { %v1298_v58 = vpop.f32.mrf.mxu0 }
 0x150   : > { %v1299_v59 = vadd.f32 %v1298_v58, %v1297_v56  ;;  %v662_v60 = vmax.f32 %v1959_v57, 0.0 }
 0x151   : > { %v1300_v61 = vpop.f32.mrf.mxu0 }
 0x152   : > { %687 = vadd.xlane.f32.xlu0 %v662_v60  ;;  %v1965_v62 = vadd.f32 %v1299_v59, %v1932_v34  ;;  %v932_v59 = vld [vmem:[#allocation7 + $0x78] sm:$0xff] }
 0x153   : > { %v1301_v63 = vpop.f32.mrf.mxu0  ;;  %1362 = vmatprep.subr.mxu1 %v932_v59 }
 0x154   : > { %v1302_v0 = vadd.f32 %v1301_v63, %v1300_v61  ;;  %v663_v1 = vmax.f32 %v1965_v62, 0.0  ;;  %v931_v61 = vld [vmem:[#allocation7 + $0x70] sm:$0xff]  ;;  %1363 = vmatpush3.msra.mxu1 %v932_v59  ;;  %v674_v63 = vlaneseq }
 0x155   : > { %v1303_v2 = vpop.f32.mrf.mxu0  ;;  %1364 = vmatprep.subr.mxu1 %v931_v61 }
 0x156   : > { %689 = vadd.xlane.f32.xlu1 %v663_v1  ;;  %v1971_v3 = vadd.f32 %v1302_v0, %v1932_v34  ;;  %1365 = vmatpush3.msra.mxu1 %v931_v61  ;;  %v675_v0 = vand.u32 127, %v674_v63  ;;  %v925_v61 = vld [vmem:[#allocation7 + $0x40] sm:$0xff] }
 0x157   : > { %v1304_v4 = vpop.f32.mrf.mxu0 }
 0x158   : > { %v1305_v5 = vadd.f32 %v1304_v4, %v1303_v2  ;;  %v664_v6 = vmax.f32 %v1971_v3, 0.0  ;;  %vm676_vm0 = vcmp.lt.s32.totalorder %v675_v0, 5 }
 0x159   : > { %v1306_v7 = vpop.f32.mrf.mxu0 }
 0x15a   : > { %691 = vadd.xlane.f32.xlu0 %v664_v6  ;;  %v1977_v8 = vadd.f32 %v1305_v5, %v1932_v34  ;;  %v1721_v5 = vmov 0.0  }
 0x15b   : > { %v1307_v9 = vpop.f32.mrf.mxu0 }
 0x15c   : > { %v1308_v10 = vadd.f32 %v1307_v9, %v1306_v7  ;;  %v665_v11 = vmax.f32 %v1977_v8, 0.0  ;;  %v2030_v7 = vsel %vm676_vm0, 1.0, %v1721_v5  ;;  %v923_v5 = vld [vmem:[#allocation7 + $0x30] sm:$0xff] }
 0x15d   : > { %v1309_v12 = vpop.f32.mrf.mxu0 }
 0x15e   : > { %693 = vadd.xlane.f32.xlu1 %v665_v11  ;;  %v1983_v13 = vadd.f32 %v1308_v10, %v1932_v34 }
 0x15f   : > { %v1310_v14 = vpop.f32.mrf.mxu0 }
 0x160   : > { %v1311_v15 = vadd.f32 %v1310_v14, %v1309_v12  ;;  %v666_v16 = vmax.f32 %v1983_v13, 0.0 }
 0x161   : > { %v1312_v17 = vpop.f32.mrf.mxu0 }
 0x162   : > { %695 = vadd.xlane.f32.xlu0 %v666_v16  ;;  %v1989_v18 = vadd.f32 %v1311_v15, %v1932_v34 }
 0x163   : > { %v1313_v19 = vpop.f32.mrf.mxu0 }
 0x164   : > { %v1314_v20 = vadd.f32 %v1313_v19, %v1312_v17  ;;  %v667_v21 = vmax.f32 %v1989_v18, 0.0 }
 0x165   : > { %v1315_v22 = vpop.f32.mrf.mxu0 }
 0x166   : > { %697 = vadd.xlane.f32.xlu1 %v667_v21  ;;  %v1995_v23 = vadd.f32 %v1314_v20, %v1932_v34 }
 0x167   : > { %v1316_v24 = vpop.f32.mrf.mxu0 }
 0x168   : > { %v1317_v25 = vadd.f32 %v1316_v24, %v1315_v22  ;;  %v668_v26 = vmax.f32 %v1995_v23, 0.0 }
 0x169   : > { %v1318_v27 = vpop.f32.mrf.mxu0 }
 0x16a   : > { %699 = vadd.xlane.f32.xlu0 %v668_v26  ;;  %v2001_v28 = vadd.f32 %v1317_v25, %v1932_v34 }
 0x16b   : > { %v1319_v29 = vpop.f32.mrf.mxu0 }
 0x16c   : > { %v1320_v30 = vadd.f32 %v1319_v29, %v1318_v27  ;;  %v669_v31 = vmax.f32 %v2001_v28, 0.0 }
 0x16d   : > { %v1321_v32 = vpop.f32.mrf.mxu0 }
 0x16e   : > { %701 = vadd.xlane.f32.xlu1 %v669_v31  ;;  %v2007_v33 = vadd.f32 %v1320_v30, %v1932_v34 }
 0x16f   : > { %v1322_v35 = vpop.f32.mrf.mxu0 }
 0x170   : > { %v1323_v36 = vadd.f32 %v1322_v35, %v1321_v32  ;;  %v670_v38 = vmax.f32 %v2007_v33, 0.0 }
 0x171   : > { %v1324_v39 = vpop.f32.mrf.mxu0 }
 0x172   : > { %703 = vadd.xlane.f32.xlu0 %v670_v38  ;;  %v2013_v41 = vadd.f32 %v1323_v36, %v1932_v34 }
 0x173   : > { %v1325_v43 = vpop.f32.mrf.mxu0 }
 0x174   : > { %v1326_v44 = vadd.f32 %v1325_v43, %v1324_v39  ;;  %v671_v46 = vmax.f32 %v2013_v41, 0.0  ;;  %v928_v39 = vld [vmem:[#allocation7 + $0x58] sm:$0xff] }
 0x175   : > { %v1327_v48 = vpop.f32.mrf.mxu0 }
 0x176   : > { %705 = vadd.xlane.f32.xlu1 %v671_v46  ;;  %v2019_v49 = vadd.f32 %v1326_v44, %v1932_v34  ;;  %v927_v44 = vld [vmem:[#allocation7 + $0x50] sm:$0xff] }
 0x177   : > { %v1328_v51 = vpop.f32.mrf.mxu0 }
 0x178   : > { %v1329_v53 = vadd.f32 %v1328_v51, %v1327_v48  ;;  %v672_v54 = vmax.f32 %v2019_v49, 0.0 }
 0x17a   : > { %707 = vadd.xlane.f32.xlu0 %v672_v54  ;;  %v2025_v56 = vadd.f32 %v1329_v53, %v1932_v34  ;;  %v926_v53 = vld [vmem:[#allocation7 + $0x48] sm:$0xff] }
 0x17c   : > { %v673_v58 = vmax.f32 %v2025_v56, 0.0 }
 0x17e   : > { %709 = vadd.xlane.f32.xlu1 %v673_v58 }
 0x1cb   : > { %v680_v2 = vpop.xlane.xlu0 %679 }
 0x1cc   : > { %v711_v4 = vmul.f32 0.2, %v680_v2  ;;  %v924_v2 = vld [vmem:[#allocation7 + $0x38] sm:$0xff] }
 0x1ce   : > { %v727_v34 = vsub.f32 %v658_v40, %v711_v4 }
 0x1cf   : > { %v682_v9 = vpop.xlane.xlu0 %681 }
 0x1d0   : > { %v712_v10 = vmul.f32 0.2, %v682_v9  ;;  %v2035_v12 = vmul.f32 %v2030_v7, %v727_v34 }
 0x1d2   : > { %v728_v14 = vsub.f32 %v659_v45, %v712_v10  ;;  %v759_v15 = vmul.f32 %v2035_v12, %v2035_v12  ;;  %v922_v10 = vld [vmem:[#allocation7 + $0x28] sm:$0xff] }
 0x1d3   : > { %v684_v17 = vpop.xlane.xlu1 %683 }
 0x1d4   : > { %v713_v19 = vmul.f32 0.2, %v684_v17  ;;  %775 = vadd.xlane.f32.xlu0 %v759_v15  ;;  %v2042_v20 = vmul.f32 %v2030_v7, %v728_v14  ;;  %v921_v15 = vld [vmem:[#allocation7 + $0x20] sm:$0xff] }
 0x1d6   : > { %v729_v37 = vsub.f32 %v660_v50, %v713_v19  ;;  %v760_v40 = vmul.f32 %v2042_v20, %v2042_v20  ;;  %v930_v50 = vld [vmem:[#allocation7 + $0x68] sm:$0xff] }
 0x1d7   : > { %v686_v22 = vpop.xlane.xlu1 %685  ;;  %1366 = vmatprep.subr.mxu1 %v930_v50 }
 0x1d8   : > { %v714_v24 = vmul.f32 0.2, %v686_v22  ;;  %777 = vadd.xlane.f32.xlu1 %v760_v40  ;;  %v2049_v42 = vmul.f32 %v2030_v7, %v729_v37  ;;  %1367 = vmatpush3.msra.mxu1 %v930_v50  ;;  %v920_v37 = vld [vmem:[#allocation7 + $0x18] sm:$0xff]  ;;  %v919_v22 = vld [vmem:[#allocation7 + $0x10] sm:$0xff] }
 0x1d9   : > { %1368 = vmatprep.subr.mxu1 %v929_v52 }
 0x1da   : > { %v730_v45 = vsub.f32 %v661_v55, %v714_v24  ;;  %v761_v25 = vmul.f32 %v2049_v42, %v2049_v42  ;;  %1369 = vmatpush3.msra.mxu1 %v929_v52 }
 0x1db   : > { %v688_v27 = vpop.xlane.xlu0 %687  ;;  %1370 = vmatprep.subr.mxu1 %v928_v39 }
 0x1dc   : > { %v715_v29 = vmul.f32 0.2, %v688_v27  ;;  %779 = vadd.xlane.f32.xlu0 %v761_v25  ;;  %v2056_v47 = vmul.f32 %v2030_v7, %v730_v45  ;;  %1371 = vmatpush3.msra.mxu1 %v928_v39  ;;  %v918_v25 = vld [vmem:[#allocation7 + $0x8] sm:$0xff] }
 0x1dd   : > { %1372 = vmatprep.subr.mxu1 %v927_v44 }
 0x1de   : > { %v731_v30 = vsub.f32 %v662_v60, %v715_v29  ;;  %v762_v32 = vmul.f32 %v2056_v47, %v2056_v47  ;;  %1373 = vmatpush3.msra.mxu1 %v927_v44  ;;  %v917_v29 = vld [vmem:[#allocation7] sm:$0xff] }
 0x1df   : > { %v690_v35 = vpop.xlane.xlu1 %689  ;;  %1374 = vmatprep.subr.mxu1 %v926_v53 }
 0x1e0   : > { %v716_v55 = vmul.f32 0.2, %v690_v35  ;;  %781 = vadd.xlane.f32.xlu1 %v762_v32  ;;  %v2063_v36 = vmul.f32 %v2030_v7, %v731_v30  ;;  %1375 = vmatpush3.msra.mxu1 %v926_v53 }
 0x1e1   : > { %1376 = vmatprep.subr.mxu1 %v925_v61 }
 0x1e2   : > { %v732_v43 = vsub.f32 %v663_v1, %v716_v55  ;;  %v763_v57 = vmul.f32 %v2063_v36, %v2063_v36  ;;  %1377 = vmatpush3.msra.mxu1 %v925_v61 }
 0x1e3   : > { %v692_v60 = vpop.xlane.xlu0 %691  ;;  %1378 = vmatprep.subr.mxu1 %v924_v2 }
 0x1e4   : > { %v717_v48 = vmul.f32 0.2, %v692_v60  ;;  %783 = vadd.xlane.f32.xlu0 %v763_v57  ;;  %v2070_v51 = vmul.f32 %v2030_v7, %v732_v43  ;;  %1379 = vmatpush3.msra.mxu1 %v924_v2 }
 0x1e5   : > { %1380 = vmatprep.subr.mxu1 %v923_v5 }
 0x1e6   : > { %v733_v59 = vsub.f32 %v664_v6, %v717_v48  ;;  %v764_v62 = vmul.f32 %v2070_v51, %v2070_v51  ;;  %1381 = vmatpush3.msra.mxu1 %v923_v5 }
 0x1e7   : > { %v694_v1 = vpop.xlane.xlu1 %693  ;;  %1382 = vmatprep.subr.mxu1 %v922_v10 }
 0x1e8   : > { %v718_v63 = vmul.f32 0.2, %v694_v1  ;;  %785 = vadd.xlane.f32.xlu1 %v764_v62  ;;  %v2077_v0 = vmul.f32 %v2030_v7, %v733_v59  ;;  %1383 = vmatpush3.msra.mxu1 %v922_v10 }
 0x1e9   : > { %1384 = vmatprep.subr.mxu1 %v921_v15 }
 0x1ea   : > { %v734_v4 = vsub.f32 %v665_v11, %v718_v63  ;;  %v765_v3 = vmul.f32 %v2077_v0, %v2077_v0  ;;  %1385 = vmatpush3.msra.mxu1 %v921_v15  ;;  %v2147_v15 = vld [vmem:[%s2277_s3] ss:$0 sm:$0xff] }
 0x1eb   : > { %v696_v6 = vpop.xlane.xlu0 %695  ;;  %1386 = vmatprep.subr.mxu1 %v920_v37 }
 0x1ec   : > { %v719_v34 = vmul.f32 0.2, %v696_v6  ;;  %787 = vadd.xlane.f32.xlu0 %v765_v3  ;;  %v2084_v9 = vmul.f32 %v2030_v7, %v734_v4  ;;  %1387 = vmatpush3.msra.mxu1 %v920_v37 }
 0x1ed   : > { %1388 = vmatprep.subr.mxu1 %v919_v22 }
 0x1ee   : > { %v735_v14 = vsub.f32 %v666_v16, %v719_v34  ;;  %v766_v8 = vmul.f32 %v2084_v9, %v2084_v9  ;;  %1389 = vmatpush3.msra.mxu1 %v919_v22 }
 0x1ef   : > { %v698_v11 = vpop.xlane.xlu1 %697  ;;  %1390 = vmatprep.subr.mxu1 %v918_v25 }
 0x1f0   : > { %v720_v17 = vmul.f32 0.2, %v698_v11  ;;  %789 = vadd.xlane.f32.xlu1 %v766_v8  ;;  %v2091_v19 = vmul.f32 %v2030_v7, %v735_v14  ;;  %1391 = vmatpush3.msra.mxu1 %v918_v25 }
 0x1f1   : > { %1392 = vmatprep.subr.mxu1 %v917_v29 }
 0x1f2   : > { %v736_v40 = vsub.f32 %v667_v21, %v720_v17  ;;  %v767_v13 = vmul.f32 %v2091_v19, %v2091_v19  ;;  %1393 = vmatpush3.msra.mxu1 %v917_v29 }
 0x1f3   : > { %v700_v16 = vpop.xlane.xlu0 %699 }
 0x1f4   : > { %v721_v24 = vmul.f32 0.2, %v700_v16  ;;  %791 = vadd.xlane.f32.xlu0 %v767_v13  ;;  %v2098_v45 = vmul.f32 %v2030_v7, %v736_v40  ;;  %v2153_v13 = vld [vmem:[%s2278_s4] ss:$0 sm:$0xff] }
 0x1f6   : > { %v737_v27 = vsub.f32 %v668_v26, %v721_v24  ;;  %v768_v18 = vmul.f32 %v2098_v45, %v2098_v45 }
 0x1f7   : > { %v702_v21 = vpop.xlane.xlu1 %701 }
 0x1f8   : > { %v722_v50 = vmul.f32 0.2, %v702_v21  ;;  %793 = vadd.xlane.f32.xlu1 %v768_v18  ;;  %v2105_v30 = vmul.f32 %v2030_v7, %v737_v27 }
 0x1fa   : > { %v738_v32 = vsub.f32 %v669_v31, %v722_v50  ;;  %v769_v23 = vmul.f32 %v2105_v30, %v2105_v30 }
 0x1fb   : > { %v704_v26 = vpop.xlane.xlu0 %703 }
 0x1fc   : > { %v723_v35 = vmul.f32 0.2, %v704_v26  ;;  %795 = vadd.xlane.f32.xlu0 %v769_v23  ;;  %v2112_v52 = vmul.f32 %v2030_v7, %v738_v32 }
 0x1fe   : > { %v739_v55 = vsub.f32 %v670_v38, %v723_v35  ;;  %v770_v39 = vmul.f32 %v2112_v52, %v2112_v52 }
 0x1ff   : > { %v706_v43 = vpop.xlane.xlu1 %705 }
 0x200   : > { %v724_v57 = vmul.f32 0.2, %v706_v43  ;;  %797 = vadd.xlane.f32.xlu1 %v770_v39  ;;  %v2119_v28 = vmul.f32 %v2030_v7, %v739_v55 }
 0x202   : > { %v740_v31 = vsub.f32 %v671_v46, %v724_v57  ;;  %v771_v60 = vmul.f32 %v2119_v28, %v2119_v28 }
 0x203   : > { %v708_v44 = vpop.xlane.xlu0 %707 }
 0x204   : > { %v725_v48 = vmul.f32 0.2, %v708_v44  ;;  %799 = vadd.xlane.f32.xlu0 %v771_v60  ;;  %v2126_v33 = vmul.f32 %v2030_v7, %v740_v31 }
 0x206   : > { %v741_v38 = vsub.f32 %v672_v54, %v725_v48  ;;  %v772_v53 = vmul.f32 %v2126_v33, %v2126_v33 }
 0x207   : > { %v710_v59 = vpop.xlane.xlu1 %709 }
 0x208   : > { %v726_v62 = vmul.f32 0.2, %v710_v59  ;;  %801 = vadd.xlane.f32.xlu1 %v772_v53  ;;  %v2133_v41 = vmul.f32 %v2030_v7, %v741_v38 }
 0x20a   : > { %v742_v46 = vsub.f32 %v673_v58, %v726_v62  ;;  %v773_v1 = vmul.f32 %v2133_v41, %v2133_v41 }
 0x20c   : > { %803 = vadd.xlane.f32.xlu0 %v773_v1  ;;  %v2140_v61 = vmul.f32 %v2030_v7, %v742_v46 }
 0x20e   : > { %v774_v49 = vmul.f32 %v2140_v61, %v2140_v61 }
 0x210   : > { %805 = vadd.xlane.f32.xlu1 %v774_v49 }
 0x25d   : > { %v776_v54 = vpop.xlane.xlu0 %775 }
 0x25e   : > { %v807_v63 = vmul.f32 0.2, %v776_v54 }
 0x260   : > { %v823_v2 = vadd.f32 1e-05, %v807_v63 }
 0x261   : > { %v778_v4 = vpop.xlane.xlu1 %777 }
 0x262   : > { %1532 = vrsqrt.f32 %v823_v2  ;;  %v808_v3 = vmul.f32 0.2, %v778_v4 }
 0x264   : > { %v824_v6 = vadd.f32 1e-05, %v808_v3 }
 0x265   : > { %v780_v56 = vpop.xlane.xlu0 %779 }
 0x266   : > { %1534 = vrsqrt.f32 %v824_v6  ;;  %v809_v58 = vmul.f32 0.2, %v780_v56 }
 0x268   : > { %v825_v5 = vadd.f32 1e-05, %v809_v58 }
 0x269   : > { %v782_v34 = vpop.xlane.xlu1 %781 }
 0x26a   : > { %1536 = vrsqrt.f32 %v825_v5  ;;  %v810_v10 = vmul.f32 0.2, %v782_v34 }
 0x26c   : > { %v826_v7 = vadd.f32 1e-05, %v810_v10 }
 0x26d   : > { %v784_v14 = vpop.xlane.xlu0 %783 }
 0x26e   : > { %1538 = vrsqrt.f32 %v826_v7  ;;  %v811_v8 = vmul.f32 0.2, %v784_v14 }
 0x26f   : > { %v1533_v11 = vpop.eup %1532 }
 0x270   : > { %v827_v17 = vadd.f32 1e-05, %v811_v8  ;;  %v855_v37 = vmul.f32 %v1533_v11, %v2035_v12 }
 0x271   : > { %v786_v40 = vpop.xlane.xlu1 %785 }
 0x272   : > { %1540 = vrsqrt.f32 %v827_v17  ;;  %v812_v16 = vmul.f32 0.2, %v786_v40  ;;  %v878_v22 = vmul.f32 %v2147_v15, %v855_v37 }
 0x273   : > { %v1535_v24 = vpop.eup %1534 }
 0x274   : > { %v828_v25 = vadd.f32 1e-05, %v812_v16  ;;  %v901_v27 = vadd.f32 %v2153_v13, %v878_v22  ;;  %v856_v18 = vmul.f32 %v1535_v24, %v2042_v20 }
 0x275   : > { %v788_v21 = vpop.xlane.xlu0 %787 }
 0x276   : > { %1542 = vrsqrt.f32 %v828_v25  ;;  %v813_v29 = vmul.f32 0.2, %v788_v21  ;;  %1394 = vmatprep.mubr.f32.mxu1 %v901_v27  ;;  %v879_v12 = vmul.f32 %v2147_v15, %v856_v18 }
 0x277   : > { %v1537_v50 = vpop.eup %1536 }
 0x278   : > { %v829_v32 = vadd.f32 1e-05, %v813_v29  ;;  %v902_v23 = vadd.f32 %v2153_v13, %v879_v12  ;;  %v857_v26 = vmul.f32 %v1537_v50, %v2049_v42 }
 0x279   : > { %v790_v35 = vpop.xlane.xlu1 %789 }
 0x27a   : > { %1544 = vrsqrt.f32 %v829_v32  ;;  %v814_v55 = vmul.f32 0.2, %v790_v35  ;;  %1395 = vmatmul.mubr.f32.vlgmr.msra.gmra.mxu1 %v902_v23  ;;  %v880_v39 = vmul.f32 %v2147_v15, %v857_v26 }
 0x27b   : > { %v1539_v43 = vpop.eup %1538 }
 0x27c   : > { %v830_v20 = vadd.f32 1e-05, %v814_v55  ;;  %v903_v57 = vadd.f32 %v2153_v13, %v880_v39  ;;  %v858_v31 = vmul.f32 %v1539_v43, %v2056_v47 }
 0x27d   : > { %v792_v60 = vpop.xlane.xlu0 %791 }
 0x27e   : > { %1546 = vrsqrt.f32 %v830_v20  ;;  %v815_v44 = vmul.f32 0.2, %v792_v60  ;;  %1397 = vmatprep.mubr.f32.mxu1 %v903_v57  ;;  %v881_v48 = vmul.f32 %v2147_v15, %v858_v31 }
 0x27f   : > { %v1541_v38 = vpop.eup %1540 }
 0x280   : > { %v831_v42 = vadd.f32 1e-05, %v815_v44  ;;  %v904_v53 = vadd.f32 %v2153_v13, %v881_v48  ;;  %v859_v59 = vmul.f32 %v1541_v38, %v2063_v36 }
 0x281   : > { %v794_v62 = vpop.xlane.xlu1 %793 }
 0x282   : > { %1548 = vrsqrt.f32 %v831_v42  ;;  %v816_v46 = vmul.f32 0.2, %v794_v62  ;;  %1398 = vmatmul.mubr.f32.gmra.mxu1 %v904_v53  ;;  %v882_v1 = vmul.f32 %v2147_v15, %v859_v59 }
 0x283   : > { %v1543_v49 = vpop.eup %1542 }
 0x284   : > { %v832_v47 = vadd.f32 1e-05, %v816_v46  ;;  %v905_v54 = vadd.f32 %v2153_v13, %v882_v1  ;;  %v860_v63 = vmul.f32 %v1543_v49, %v2070_v51 }
 0x285   : > { %v796_v2 = vpop.xlane.xlu0 %795 }
 0x286   : > { %1550 = vrsqrt.f32 %v832_v47  ;;  %v817_v4 = vmul.f32 0.2, %v796_v2  ;;  %1400 = vmatprep.mubr.f32.mxu1 %v905_v54  ;;  %v883_v3 = vmul.f32 %v2147_v15, %v860_v63  ;;  %v1257_v2 = vld [vmem:[%s2280_s6] ss:$0 sm:$0xff] }
 0x287   : > { %v1545_v6 = vpop.eup %1544 }
 0x288   : > { %v833_v36 = vadd.f32 1e-05, %v817_v4  ;;  %v906_v56 = vadd.f32 %v2153_v13, %v883_v3  ;;  %v861_v58 = vmul.f32 %v1545_v6, %v2077_v0 }
 0x289   : > { %v798_v5 = vpop.xlane.xlu1 %797 }
 0x28a   : > { %1552 = vrsqrt.f32 %v833_v36  ;;  %v818_v34 = vmul.f32 0.2, %v798_v5  ;;  %1401 = vmatmul.mubr.f32.gmra.mxu1 %v906_v56  ;;  %v884_v10 = vmul.f32 %v2147_v15, %v861_v58 }
 0x28b   : > { %v1547_v7 = vpop.eup %1546 }
 0x28c   : > { %v834_v51 = vadd.f32 1e-05, %v818_v34  ;;  %v907_v14 = vadd.f32 %v2153_v13, %v884_v10  ;;  %v862_v8 = vmul.f32 %v1547_v7, %v2084_v9 }
 0x28d   : > { %v800_v11 = vpop.xlane.xlu0 %799 }
 0x28e   : > { %1554 = vrsqrt.f32 %v834_v51  ;;  %v819_v17 = vmul.f32 0.2, %v800_v11  ;;  %1403 = vmatprep.mubr.f32.mxu1 %v907_v14  ;;  %v885_v37 = vmul.f32 %v2147_v15, %v862_v8 }
 0x28f   : > { %v1549_v40 = vpop.eup %1548 }
 0x290   : > { %v835_v0 = vadd.f32 1e-05, %v819_v17  ;;  %v908_v16 = vadd.f32 %v2153_v13, %v885_v37  ;;  %v863_v22 = vmul.f32 %v1549_v40, %v2091_v19 }
 0x291   : > { %v802_v24 = vpop.xlane.xlu1 %801 }
 0x292   : > { %1556 = vrsqrt.f32 %v835_v0  ;;  %v820_v25 = vmul.f32 0.2, %v802_v24  ;;  %1404 = vmatmul.mubr.f32.gmra.mxu1 %v908_v16  ;;  %v886_v27 = vmul.f32 %v2147_v15, %v863_v22 }
 0x293   : > { %v1551_v18 = vpop.eup %1550 }
 0x294   : > { %v836_v9 = vadd.f32 1e-05, %v820_v25  ;;  %v909_v21 = vadd.f32 %v2153_v13, %v886_v27  ;;  %v864_v29 = vmul.f32 %v1551_v18, %v2098_v45 }
 0x295   : > { %v804_v12 = vpop.xlane.xlu0 %803 }
 0x296   : > { %1558 = vrsqrt.f32 %v836_v9  ;;  %v821_v50 = vmul.f32 0.2, %v804_v12  ;;  %1406 = vmatprep.mubr.f32.mxu1 %v909_v21  ;;  %v887_v32 = vmul.f32 %v2147_v15, %v864_v29 }
 0x297   : > { %v1553_v23 = vpop.eup %1552 }
 0x298   : > { %v837_v19 = vadd.f32 1e-05, %v821_v50  ;;  %v910_v26 = vadd.f32 %v2153_v13, %v887_v32  ;;  %v865_v35 = vmul.f32 %v1553_v23, %v2105_v30 }
 0x299   : > { %v806_v55 = vpop.xlane.xlu1 %805 }
 0x29a   : > { %1560 = vrsqrt.f32 %v837_v19  ;;  %v822_v39 = vmul.f32 0.2, %v806_v55  ;;  %1407 = vmatmul.mubr.f32.gmra.mxu1 %v910_v26  ;;  %v888_v43 = vmul.f32 %v2147_v15, %v865_v35 }
 0x29b   : > { %v1555_v20 = vpop.eup %1554 }
 0x29c   : > { %v838_v45 = vadd.f32 1e-05, %v822_v39  ;;  %v911_v57 = vadd.f32 %v2153_v13, %v888_v43  ;;  %v866_v31 = vmul.f32 %v1555_v20, %v2112_v52 }
 0x29e   : > { %1562 = vrsqrt.f32 %v838_v45  ;;  %1409 = vmatprep.mubr.f32.mxu1 %v911_v57  ;;  %v889_v60 = vmul.f32 %v2147_v15, %v866_v31 }
 0x29f   : > { %v1557_v44 = vpop.eup %1556 }
 0x2a0   : > { %v912_v48 = vadd.f32 %v2153_v13, %v889_v60  ;;  %v867_v30 = vmul.f32 %v1557_v44, %v2119_v28 }
 0x2a2   : > { %1410 = vmatmul.mubr.f32.gmra.mxu1 %v912_v48  ;;  %v890_v38 = vmul.f32 %v2147_v15, %v867_v30 }
 0x2a3   : > { %v1559_v42 = vpop.eup %1558 }
 0x2a4   : > { %v913_v53 = vadd.f32 %v2153_v13, %v890_v38  ;;  %v868_v59 = vmul.f32 %v1559_v42, %v2126_v33 }
 0x2a6   : > { %1412 = vmatprep.mubr.f32.mxu1 %v913_v53  ;;  %v891_v52 = vmul.f32 %v2147_v15, %v868_v59 }
 0x2a7   : > { %v1561_v62 = vpop.eup %1560 }
 0x2a8   : > { %v914_v46 = vadd.f32 %v2153_v13, %v891_v52  ;;  %v869_v1 = vmul.f32 %v1561_v62, %v2133_v41 }
 0x2aa   : > { %1413 = vmatmul.mubr.f32.gmra.mxu1 %v914_v46  ;;  %v892_v28 = vmul.f32 %v2147_v15, %v869_v1 }
 0x2ab   : > { %v1563_v49 = vpop.eup %1562 }
 0x2ac   : > { %v915_v47 = vadd.f32 %v2153_v13, %v892_v28  ;;  %v870_v54 = vmul.f32 %v1563_v49, %v2140_v61 }
 0x2ae   : > { %1415 = vmatprep.mubr.f32.mxu1 %v915_v47  ;;  %v893_v33 = vmul.f32 %v2147_v15, %v870_v54 }
 0x2b0   : > { %v916_v63 = vadd.f32 %v2153_v13, %v893_v33 }
 0x2b2   : > { %1416 = vmatmul.mubr.f32.gmra.mxu1 %v916_v63 }
 0x33a   : > { %v1396_v4 = vpop.f32.mrf.mxu1 }
 0x33b   : > { %v1012_v41 = vadd.f32 %v1396_v4, %v1257_v2 }
 0x33c   : > { %v1006_v3 = vpop.f32.mrf.mxu1 }
 0x33d   : > { %1086 = vst [vmem:[%s2207_s14 + $0x8] sm:$0xff] %v1012_v41  ;;  %v1007_v61 = vadd.f32 %v1257_v2, %v1006_v3 }
 0x33f   : > { %1085 = vst [vmem:[%s2207_s14] sm:$0xff] %v1007_v61 }
 0x342   : > { %v1399_v15 = vpop.f32.mrf.mxu1 }
 0x343   : > { %v1022_v13 = vadd.f32 %v1399_v15, %v1257_v2 }
 0x344   : > { %v1016_v6 = vpop.f32.mrf.mxu1 }
 0x345   : > { %1088 = vst [vmem:[%s2207_s14 + $0x18] sm:$0xff] %v1022_v13  ;;  %v1017_v36 = vadd.f32 %v1257_v2, %v1016_v6 }
 0x347   : > { %1087 = vst [vmem:[%s2207_s14 + $0x10] sm:$0xff] %v1017_v36 }
 0x34a   : > { %v1402_v56 = vpop.f32.mrf.mxu1 }
 0x34b   : > { %v1032_v58 = vadd.f32 %v1402_v56, %v1257_v2 }
 0x34c   : > { %v1026_v5 = vpop.f32.mrf.mxu1 }
 0x34d   : > { %1090 = vst [vmem:[%s2207_s14 + $0x28] sm:$0xff] %v1032_v58  ;;  %v1027_v34 = vadd.f32 %v1257_v2, %v1026_v5 }
 0x34f   : > { %1089 = vst [vmem:[%s2207_s14 + $0x20] sm:$0xff] %v1027_v34 }
 0x352   : > { %v1405_v10 = vpop.f32.mrf.mxu1 }
 0x353   : > { %v1042_v7 = vadd.f32 %v1405_v10, %v1257_v2 }
 0x354   : > { %v1036_v51 = vpop.f32.mrf.mxu1 }
 0x355   : > { %1092 = vst [vmem:[%s2207_s14 + $0x38] sm:$0xff] %v1042_v7  ;;  %v1037_v14 = vadd.f32 %v1257_v2, %v1036_v51 }
 0x357   : > { %1091 = vst [vmem:[%s2207_s14 + $0x30] sm:$0xff] %v1037_v14 }
 0x35a   : > { %v1408_v8 = vpop.f32.mrf.mxu1 }
 0x35b   : > { %v1052_v11 = vadd.f32 %v1408_v8, %v1257_v2 }
 0x35c   : > { %v1046_v17 = vpop.f32.mrf.mxu1 }
 0x35d   : > { %1094 = vst [vmem:[%s2207_s14 + $0x48] sm:$0xff] %v1052_v11  ;;  %v1047_v37 = vadd.f32 %v1257_v2, %v1046_v17 }
 0x35f   : > { %1093 = vst [vmem:[%s2207_s14 + $0x40] sm:$0xff] %v1047_v37 }
 0x362   : > { %v1411_v40 = vpop.f32.mrf.mxu1 }
 0x363   : > { %v1062_v0 = vadd.f32 %v1411_v40, %v1257_v2 }
 0x364   : > { %v1056_v16 = vpop.f32.mrf.mxu1 }
 0x365   : > { %1096 = vst [vmem:[%s2207_s14 + $0x58] sm:$0xff] %v1062_v0  ;;  %v1057_v22 = vadd.f32 %v1257_v2, %v1056_v16 }
 0x367   : > { %1095 = vst [vmem:[%s2207_s14 + $0x50] sm:$0xff] %v1057_v22 }
 0x36a   : > { %v1414_v24 = vpop.f32.mrf.mxu1 }
 0x36b   : > { %v1072_v25 = vadd.f32 %v1414_v24, %v1257_v2 }
 0x36c   : > { %v1066_v27 = vpop.f32.mrf.mxu1 }
 0x36d   : > { %1098 = vst [vmem:[%s2207_s14 + $0x68] sm:$0xff] %v1072_v25  ;;  %v1067_v18 = vadd.f32 %v1257_v2, %v1066_v27 }
 0x36f   : > { %1097 = vst [vmem:[%s2207_s14 + $0x60] sm:$0xff] %v1067_v18 }
 0x372   : > { %v1417_v9 = vpop.f32.mrf.mxu1 }
 0x373   : > { %v1082_v21 = vadd.f32 %v1417_v9, %v1257_v2 }
 0x374   : > { %v1076_v29 = vpop.f32.mrf.mxu1 }
 0x375   : > { %1100 = vst [vmem:[%s2207_s14 + $0x78] sm:$0xff] %v1082_v21  ;;  %v1077_v12 = vadd.f32 %v1257_v2, %v1076_v29 }
 0x377   : > { %1099 = vst [vmem:[%s2207_s14 + $0x70] sm:$0xff] %v1077_v12 }
 0x378   : > { %1657 = shalt.err (!%p1654_p9)
}
 0x379   : > { %s1658_s13 = scalar_lea.hbm %s2228_s11, 2048  ;;  %s1662_s16 = scalar_lea.hbm %s2281_s7, 6144 }
 0x37a   : > { %p1659_p12 = scmp.ne.s32.totalorder %s2228_s11, %s1658_s13  ;;  %p1663_p4 = scmp.lt.s32.totalorder %s2228_s11, %s2281_s7 }
 0x37b   : > { %p1664_p8 = scmp.lt.s32.totalorder %s1662_s16, %s1658_s13 }
 0x37c   : > { %p1660_p3 = pnand %p1659_p12, %p2303_p0 }
 0x37d   : > { %p1665_p7 = por %p1664_p8, %p1663_p4 }
 0x37e   : > { %p1661_p13 = pneg %p1660_p3 }
 0x380   : > { %p1666_p10 = pnand %p1665_p7, %p1661_p13 }
 0x382   : > { %1669 = shalt.err (!%p1666_p10)
}
 0x383   : > { %s1723_s1 = smov 128   ;;  %s1724_s17 = smov 8  }
 0x384   : > { %1428 = dma.vmem_to_hbm [thread:$0]  (%p2303_p0), %s2230_s18, 2048, %s2228_s11, %s1102_s30, %s1723_s1, %s1723_s1, %s1724_s17  }
 0x385 PF: > { %p1450_p1 = scmp.ge.s32.totalorder %s1712_s27, 2  ;;  %s1130_s9 = sand.u32 1, %s1700_s24  }
 0x386   : > { %p2304_p2 = scmp.ne.s32.totalorder %s2290_s8, 0  ;;  %s1131_s28 = scalar_lea.sflag [#allocation4], %s1130_s9 }
 0x388   : > { %p1442_p6 = pnand %p1450_p1, %p2304_p2 }
 0x38a   : > { %p1443_p11 = pneg %p1442_p6 }
 0x38c   : > { %1695 = dma.done.wait (%p1443_p11), %s1131_s28, 2048  }
 0x38d   : > { %1697 = vsyncadd (%p1443_p11), %s1131_s28, 4294965248  ;;  %p21_p5 = scmp.ge.s32.totalorder %s1839_s10, 5   ;;  %s2305_s24 = smov %s1704_s25 }
 0x38e   : > { %s2306_s25 = smov %s1708_s26  ;;  %s2307_s26 = smov %s1848_s15 }
 0x38f   : > { %s2308_s27 = smov %s1839_s10  ;;  %23 = sbr.rel (!%p21_p5) target bundleno = 8 (0x8), region = 101 }
 0x394   :  { %1136 = vsyncpa [#allocation3], 1 }
 0x395   :  { %1138 = vsyncpa [#allocation3 + $0x1], 1 }
 0x396   :  { %1139 = vsyncpa [#allocation6], 1 }
 0x397   :  { %1140 = vsyncpa [#allocation4], 1 }
 0x398   :  { %1142 = vsyncpa [#allocation4 + $0x1], 1 }

</bundles_post_ra>
